<compile_context>
chip_gen: v5e
topology: v5e:2x2
jax: 0.10.0
libtpu: 0.0.40
codegen_flags: <defaults>
</compile_context>

<pallas_src>
import functools

import jax
import jax.numpy as jnp
from jax import lax
from jax.experimental import pallas as pl
from jax.experimental.pallas import tpu as pltpu


# ----------------------------------------------------------------------------
# Counter-based in-kernel PRNG (portable: plain jnp int/float ops only).
# ----------------------------------------------------------------------------
def _hash_u32(x):
    """SplitMix32-style finalizer (xorshift-multiply): good avalanche, u32->u32."""
    x = x ^ (x >> 16)
    x = x * jnp.uint32(0x7FEB352D)
    x = x ^ (x >> 15)
    x = x * jnp.uint32(0x846CA68B)
    x = x ^ (x >> 16)
    return x


def _std_normal_from_index(gid, seed_u32):
    """~N(0,1) noise from a counter-based PRNG keyed on (seed, element index).

    Sums 12 independent 16-bit uniforms (Irwin-Hall) drawn by hashing
    (seed, global element id, salt). Grid/tile-layout invariant.
    """
    # TODO(synk): exact reproduction of torch.randn_like's RNG stream is not
    # possible; this matches the distribution (Irwin-Hall-12 approximation).
    base = gid.astype(jnp.uint32) * jnp.uint32(0x9E3779B9) + seed_u32
    total = jnp.zeros(gid.shape, jnp.int32)
    for i in range(6):
        salt = jnp.uint32((i * 0x632BE59B + 0x85EBCA6B) & 0xFFFFFFFF)
        h = _hash_u32(base + salt)
        total = total + (h & jnp.uint32(0xFFFF)).astype(jnp.int32)
        total = total + (h >> 16).astype(jnp.int32)
    # 12 x U{0..65535}: mean = 6*65535, std ~= 65536.
    return (total.astype(jnp.float32) - jnp.float32(6.0 * 65535.0)) * jnp.float32(
        1.0 / 65536.0)


# ----------------------------------------------------------------------------
# Waveform path: additive Gaussian background noise.
# ----------------------------------------------------------------------------
def _waveform_noise_kernel(seed_ref, x_ref, o_ref, *, noise_level, t_total,
                           block_b, block_t):
    bi = pl.program_id(0)
    ti = pl.program_id(1)
    shape = x_ref.shape  # (block_b, block_t)
    row = lax.broadcasted_iota(jnp.int32, shape, 0) + bi * block_b
    col = lax.broadcasted_iota(jnp.int32, shape, 1) + ti * block_t
    gid = row * t_total + col  # unique global element id -> per-tile-correct noise
    seed = seed_ref[0].astype(jnp.uint32)
    noise = _std_normal_from_index(gid, seed)
    y = x_ref[...].astype(jnp.float32) + noise * jnp.float32(noise_level)
    o_ref[...] = y.astype(o_ref.dtype)


def waveform_augment(x, key, augment_magnitude=2, *,
                     block_rows=8, block_time_target=65536):
    """Equivalent of apply_time_augmentation / add_background_noise."""
    noise_level = 0.0025 * augment_magnitude
    B, T = x.shape
    # Lane-dense tiling: time block is a multiple of 128 (or full T); row block is
    # full B or 8. Each block <= ~2 MiB so 2x double-buffered in+out stays well
    # under every generation's scoped VMEM limit.
    block_b = B if B <= block_rows else block_rows
    block_t = T if T <= block_time_target else (block_time_target // 128) * 128
    grid = (pl.cdiv(B, block_b), pl.cdiv(T, block_t))

    seed32 = jax.random.randint(key, (1,), 0, jnp.iinfo(jnp.int32).max,
                                dtype=jnp.int32)
    kernel = functools.partial(_waveform_noise_kernel, noise_level=noise_level,
                               t_total=T, block_b=block_b, block_t=block_t)
    return pl.pallas_call(
        kernel,
        out_shape=jax.ShapeDtypeStruct((B, T), x.dtype),
        grid_spec=pltpu.PrefetchScalarGridSpec(
            num_scalar_prefetch=1,
            grid=grid,
            in_specs=[pl.BlockSpec((block_b, block_t), lambda bi, ti, s: (bi, ti))],
            out_specs=pl.BlockSpec((block_b, block_t), lambda bi, ti, s: (bi, ti)),
        ),
        compiler_params=pltpu.CompilerParams(
            dimension_semantics=("parallel", "parallel"),
            vmem_limit_bytes=32 * 1024 * 1024),
    )(seed32, x)


# ----------------------------------------------------------------------------
# Spectrogram path: frequency masking + time masking (single mask per batch).
# ----------------------------------------------------------------------------
def _spec_mask_kernel(bounds_ref, spec_ref, o_ref, *, block_t):
    # bounds: [f_lo, f_hi, t_lo, t_hi] int32 (SMEM via scalar prefetch).
    ti = pl.program_id(1)
    f_lo = bounds_ref[0]
    f_hi = bounds_ref[1]
    t_lo = bounds_ref[2]
    t_hi = bounds_ref[3]
    shape = spec_ref.shape  # (block_b, F, block_t)
    f_idx = lax.broadcasted_iota(jnp.int32, shape, 1)
    t_idx = lax.broadcasted_iota(jnp.int32, shape, 2) + ti * block_t
    masked = ((f_idx >= f_lo) & (f_idx < f_hi)) | ((t_idx >= t_lo) & (t_idx < t_hi))
    x = spec_ref[...]
    o_ref[...] = jnp.where(masked, jnp.zeros_like(x), x)


def spectrogram_augment(spec, key, n_mels, target_length, hop_length,
                        augment_magnitude=2, *, block_time_target=4096,
                        block_bytes_target=2 * 1024 * 1024):
    """Equivalent of apply_freq_augmentation (FrequencyMasking + TimeMasking)."""
    B, F, T = spec.shape
    freq_mask_param = int(0.05 * n_mels * augment_magnitude)
    total_time_steps = target_length // hop_length + 1
    time_mask_param = int(0.05 * total_time_steps * augment_magnitude)
    # Note: torchaudio samples the mask start against the *actual* T of the input
    # (as we do here); ideally T == target_length//hop_length + 1.

    # torchaudio _AxisMasking: width ~ U(0, mask_param), start ~ U(0, axis - width),
    # then integer bounds: lo = floor(start), hi = lo + floor(width).
    k1, k2, k3, k4 = jax.random.split(key, 4)
    fw = jax.random.uniform(k1, (), jnp.float32) * freq_mask_param
    f0 = jax.random.uniform(k2, (), jnp.float32) * (F - fw)
    tw = jax.random.uniform(k3, (), jnp.float32) * time_mask_param
    t0 = jax.random.uniform(k4, (), jnp.float32) * (T - tw)
    f_lo = f0.astype(jnp.int32)
    f_hi = f_lo + fw.astype(jnp.int32)
    t_lo = t0.astype(jnp.int32)
    t_hi = t_lo + tw.astype(jnp.int32)
    bounds = jnp.stack([f_lo, f_hi, t_lo, t_hi])

    # Lane-dense time tile (multiple of 128 or full T); batch tile sized to keep
    # each block around 2 MiB.
    block_t = T if T <= block_time_target else (block_time_target // 128) * 128
    bytes_per_row = F * block_t * spec.dtype.itemsize
    block_b = int(max(1, min(B, block_bytes_target // max(1, bytes_per_row))))
    grid = (pl.cdiv(B, block_b), pl.cdiv(T, block_t))

    kernel = functools.partial(_spec_mask_kernel, block_t=block_t)
    return pl.pallas_call(
        kernel,
        out_shape=jax.ShapeDtypeStruct((B, F, T), spec.dtype),
        grid_spec=pltpu.PrefetchScalarGridSpec(
            num_scalar_prefetch=1,
            grid=grid,
            in_specs=[pl.BlockSpec((block_b, F, block_t),
                                   lambda bi, ti, p: (bi, 0, ti))],
            out_specs=pl.BlockSpec((block_b, F, block_t),
                                   lambda bi, ti, p: (bi, 0, ti)),
        ),
        compiler_params=pltpu.CompilerParams(
            dimension_semantics=("parallel", "parallel"),
            vmem_limit_bytes=32 * 1024 * 1024),
    )(bounds, spec)


# ----------------------------------------------------------------------------
# Module-equivalent wrapper.
# ----------------------------------------------------------------------------
class AudioAugmentations:
    def __init__(self, apply_augmentation=True, signal='waveform',
                 sample_rate=None, n_mels=None, target_length=None,
                 hop_length=None, seed=None, augment_magnitude=2):
        self.apply_augmentation = apply_augmentation
        self.signal = signal
        self.sample_rate = sample_rate
        self.n_mels = n_mels
        self.target_length = target_length
        self.hop_length = hop_length
        self.seed = seed
        self.augment_magnitude = augment_magnitude
        self._base_seed = seed if seed is not None else 0
        self._calls = 0  # gives fresh randomness per call where torch would

    def __call__(self, x):
        if not self.apply_augmentation:
            return x
        base = jax.random.PRNGKey(self._base_seed)
        if self.signal == 'waveform':
            # torch semantics: when `seed` is given, add_background_noise re-seeds
            # on every call (identical noise each call); otherwise noise is fresh.
            if self.seed is not None:
                key = base
            else:
                key = jax.random.fold_in(base, self._calls)
            self._calls += 1
            return waveform_augment(x, key, self.augment_magnitude)
        # spectrogram: torch never re-seeds here -> fresh masks every call.
        key = jax.random.fold_in(base, self._calls)
        self._calls += 1
        return spectrogram_augment(x, key, self.n_mels, self.target_length,
                                   self.hop_length, self.augment_magnitude)


if __name__ == "__main__":
    root = jax.random.PRNGKey(0)
    kw, ks = jax.random.split(root)

    # --- waveform path (module default) ---
    B, T = 2, 1024
    waveform = jax.random.normal(kw, (B, T), dtype=jnp.float32)
    aug_wave = AudioAugmentations(apply_augmentation=True, signal='waveform',
                                  sample_rate=16000, seed=0, augment_magnitude=2)
    y_wave = aug_wave(waveform)
    jax.block_until_ready(y_wave)
    assert y_wave.shape == (B, T) and y_wave.dtype == jnp.float32
    noise = (y_wave - waveform) / 0.005  # noise_level = 0.0025 * 2
    assert float(jnp.max(jnp.abs(noise))) < 6.5       # Irwin-Hall-12 bound
    assert abs(float(jnp.mean(noise))) < 0.15         # ~N(0,1) mean
    assert 0.85 < float(jnp.std(noise)) < 1.15        # ~N(0,1) std

    # --- spectrogram path ---
    n_mels, target_length, hop_length = 32, 1016, 8   # -> 128 time frames
    n_time = target_length // hop_length + 1
    spec = jax.random.uniform(ks, (B, n_mels, n_time), dtype=jnp.float32) + 1.0
    aug_spec = AudioAugmentations(apply_augmentation=True, signal='spectrogram',
                                  n_mels=n_mels, target_length=target_length,
                                  hop_length=hop_length, seed=0,
                                  augment_magnitude=2)
    y_spec = aug_spec(spec)
    jax.block_until_ready(y_spec)
    assert y_spec.shape == (B, n_mels, n_time) and y_spec.dtype == jnp.float32
    # masked entries are exactly zero, unmasked entries are untouched
    assert bool(jnp.all((y_spec == 0.0) | (y_spec == spec)))

    print("KERNEL_OK")
</pallas_src>

<mosaic_0001>
module attributes {stable_mosaic.version = 11 : i64} {
  func.func @_waveform_noise_kernel(%arg0: i32, %arg1: i32, %arg2: memref<1xi32, #tpu.memory_space<smem>>, %arg3: memref<2x1024xf32, #tpu.memory_space<vmem>>, %arg4: memref<2x1024xf32, #tpu.memory_space<vmem>>) attributes {dimension_semantics = [#tpu.dimension_semantics<parallel>, #tpu.dimension_semantics<parallel>], iteration_bounds = array<i64: 1, 1>, scalar_prefetch = 1 : i64, scratch_operands = 0 : i64, tpu.core_type = #tpu.core_type<tc>, window_params = [{transform_indices = @transform_0, window_bounds = array<i64: 2, 1024>}, {transform_indices = @transform_1, window_bounds = array<i64: 2, 1024>}]} {
    %0 = tpu.iota {dimensions = array<i32: 0>} : vector<2x1024xi32>
    %c2_i32 = arith.constant 2 : i32
    %1 = arith.muli %arg0, %c2_i32 : i32
    %2 = vector.broadcast %1 : i32 to vector<2x1024xi32>
    %3 = arith.addi %0, %2 : vector<2x1024xi32>
    %4 = tpu.iota {dimensions = array<i32: 1>} : vector<2x1024xi32>
    %c1024_i32 = arith.constant 1024 : i32
    %5 = arith.muli %arg1, %c1024_i32 : i32
    %6 = vector.broadcast %5 : i32 to vector<2x1024xi32>
    %7 = arith.addi %4, %6 : vector<2x1024xi32>
    %c1024_i32_0 = arith.constant 1024 : i32
    %8 = vector.broadcast %c1024_i32_0 : i32 to vector<2x1024xi32>
    %9 = arith.muli %3, %8 : vector<2x1024xi32>
    %10 = arith.addi %9, %7 : vector<2x1024xi32>
    %c0 = arith.constant 0 : index
    %11 = memref.load %arg2[%c0] : memref<1xi32, #tpu.memory_space<smem>>
    %c-1640531527_i32 = arith.constant -1640531527 : i32
    %12 = vector.broadcast %c-1640531527_i32 : i32 to vector<2x1024xi32>
    %13 = arith.muli %10, %12 : vector<2x1024xi32>
    %14 = vector.broadcast %11 : i32 to vector<2x1024xi32>
    %15 = arith.addi %13, %14 : vector<2x1024xi32>
    %c0_i32 = arith.constant 0 : i32
    %16 = vector.broadcast %c0_i32 : i32 to vector<2x1024xi32>
    %c-2048144789_i32 = arith.constant -2048144789 : i32
    %17 = vector.broadcast %c-2048144789_i32 : i32 to vector<2x1024xi32>
    %18 = arith.addi %15, %17 : vector<2x1024xi32>
    %c16_i32 = arith.constant 16 : i32
    %19 = vector.broadcast %c16_i32 : i32 to vector<2x1024xi32>
    %20 = arith.shrui %18, %19 : vector<2x1024xi32>
    %21 = arith.xori %18, %20 : vector<2x1024xi32>
    %c2146121005_i32 = arith.constant 2146121005 : i32
    %22 = vector.broadcast %c2146121005_i32 : i32 to vector<2x1024xi32>
    %23 = arith.muli %21, %22 : vector<2x1024xi32>
    %c15_i32 = arith.constant 15 : i32
    %24 = vector.broadcast %c15_i32 : i32 to vector<2x1024xi32>
    %25 = arith.shrui %23, %24 : vector<2x1024xi32>
    %26 = arith.xori %23, %25 : vector<2x1024xi32>
    %c-2073254261_i32 = arith.constant -2073254261 : i32
    %27 = vector.broadcast %c-2073254261_i32 : i32 to vector<2x1024xi32>
    %28 = arith.muli %26, %27 : vector<2x1024xi32>
    %c16_i32_1 = arith.constant 16 : i32
    %29 = vector.broadcast %c16_i32_1 : i32 to vector<2x1024xi32>
    %30 = arith.shrui %28, %29 : vector<2x1024xi32>
    %31 = arith.xori %28, %30 : vector<2x1024xi32>
    %c65535_i32 = arith.constant 65535 : i32
    %32 = vector.broadcast %c65535_i32 : i32 to vector<2x1024xi32>
    %33 = arith.andi %31, %32 : vector<2x1024xi32>
    %34 = arith.addi %16, %33 : vector<2x1024xi32>
    %c16_i32_2 = arith.constant 16 : i32
    %35 = vector.broadcast %c16_i32_2 : i32 to vector<2x1024xi32>
    %36 = arith.shrui %31, %35 : vector<2x1024xi32>
    %37 = arith.addi %34, %36 : vector<2x1024xi32>
    %c-384323578_i32 = arith.constant -384323578 : i32
    %38 = vector.broadcast %c-384323578_i32 : i32 to vector<2x1024xi32>
    %39 = arith.addi %15, %38 : vector<2x1024xi32>
    %c16_i32_3 = arith.constant 16 : i32
    %40 = vector.broadcast %c16_i32_3 : i32 to vector<2x1024xi32>
    %41 = arith.shrui %39, %40 : vector<2x1024xi32>
    %42 = arith.xori %39, %41 : vector<2x1024xi32>
    %c2146121005_i32_4 = arith.constant 2146121005 : i32
    %43 = vector.broadcast %c2146121005_i32_4 : i32 to vector<2x1024xi32>
    %44 = arith.muli %42, %43 : vector<2x1024xi32>
    %c15_i32_5 = arith.constant 15 : i32
    %45 = vector.broadcast %c15_i32_5 : i32 to vector<2x1024xi32>
    %46 = arith.shrui %44, %45 : vector<2x1024xi32>
    %47 = arith.xori %44, %46 : vector<2x1024xi32>
    %c-2073254261_i32_6 = arith.constant -2073254261 : i32
    %48 = vector.broadcast %c-2073254261_i32_6 : i32 to vector<2x1024xi32>
    %49 = arith.muli %47, %48 : vector<2x1024xi32>
    %c16_i32_7 = arith.constant 16 : i32
    %50 = vector.broadcast %c16_i32_7 : i32 to vector<2x1024xi32>
    %51 = arith.shrui %49, %50 : vector<2x1024xi32>
    %52 = arith.xori %49, %51 : vector<2x1024xi32>
    %c65535_i32_8 = arith.constant 65535 : i32
    %53 = vector.broadcast %c65535_i32_8 : i32 to vector<2x1024xi32>
    %54 = arith.andi %52, %53 : vector<2x1024xi32>
    %55 = arith.addi %37, %54 : vector<2x1024xi32>
    %c16_i32_9 = arith.constant 16 : i32
    %56 = vector.broadcast %c16_i32_9 : i32 to vector<2x1024xi32>
    %57 = arith.shrui %52, %56 : vector<2x1024xi32>
    %58 = arith.addi %55, %57 : vector<2x1024xi32>
    %c1279497633_i32 = arith.constant 1279497633 : i32
    %59 = vector.broadcast %c1279497633_i32 : i32 to vector<2x1024xi32>
    %60 = arith.addi %15, %59 : vector<2x1024xi32>
    %c16_i32_10 = arith.constant 16 : i32
    %61 = vector.broadcast %c16_i32_10 : i32 to vector<2x1024xi32>
    %62 = arith.shrui %60, %61 : vector<2x1024xi32>
    %63 = arith.xori %60, %62 : vector<2x1024xi32>
    %c2146121005_i32_11 = arith.constant 2146121005 : i32
    %64 = vector.broadcast %c2146121005_i32_11 : i32 to vector<2x1024xi32>
    %65 = arith.muli %63, %64 : vector<2x1024xi32>
    %c15_i32_12 = arith.constant 15 : i32
    %66 = vector.broadcast %c15_i32_12 : i32 to vector<2x1024xi32>
    %67 = arith.shrui %65, %66 : vector<2x1024xi32>
    %68 = arith.xori %65, %67 : vector<2x1024xi32>
    %c-2073254261_i32_13 = arith.constant -2073254261 : i32
    %69 = vector.broadcast %c-2073254261_i32_13 : i32 to vector<2x1024xi32>
    %70 = arith.muli %68, %69 : vector<2x1024xi32>
    %c16_i32_14 = arith.constant 16 : i32
    %71 = vector.broadcast %c16_i32_14 : i32 to vector<2x1024xi32>
    %72 = arith.shrui %70, %71 : vector<2x1024xi32>
    %73 = arith.xori %70, %72 : vector<2x1024xi32>
    %c65535_i32_15 = arith.constant 65535 : i32
    %74 = vector.broadcast %c65535_i32_15 : i32 to vector<2x1024xi32>
    %75 = arith.andi %73, %74 : vector<2x1024xi32>
    %76 = arith.addi %58, %75 : vector<2x1024xi32>
    %c16_i32_16 = arith.constant 16 : i32
    %77 = vector.broadcast %c16_i32_16 : i32 to vector<2x1024xi32>
    %78 = arith.shrui %73, %77 : vector<2x1024xi32>
    %79 = arith.addi %76, %78 : vector<2x1024xi32>
    %c-1351648452_i32 = arith.constant -1351648452 : i32
    %80 = vector.broadcast %c-1351648452_i32 : i32 to vector<2x1024xi32>
    %81 = arith.addi %15, %80 : vector<2x1024xi32>
    %c16_i32_17 = arith.constant 16 : i32
    %82 = vector.broadcast %c16_i32_17 : i32 to vector<2x1024xi32>
    %83 = arith.shrui %81, %82 : vector<2x1024xi32>
    %84 = arith.xori %81, %83 : vector<2x1024xi32>
    %c2146121005_i32_18 = arith.constant 2146121005 : i32
    %85 = vector.broadcast %c2146121005_i32_18 : i32 to vector<2x1024xi32>
    %86 = arith.muli %84, %85 : vector<2x1024xi32>
    %c15_i32_19 = arith.constant 15 : i32
    %87 = vector.broadcast %c15_i32_19 : i32 to vector<2x1024xi32>
    %88 = arith.shrui %86, %87 : vector<2x1024xi32>
    %89 = arith.xori %86, %88 : vector<2x1024xi32>
    %c-2073254261_i32_20 = arith.constant -2073254261 : i32
    %90 = vector.broadcast %c-2073254261_i32_20 : i32 to vector<2x1024xi32>
    %91 = arith.muli %89, %90 : vector<2x1024xi32>
    %c16_i32_21 = arith.constant 16 : i32
    %92 = vector.broadcast %c16_i32_21 : i32 to vector<2x1024xi32>
    %93 = arith.shrui %91, %92 : vector<2x1024xi32>
    %94 = arith.xori %91, %93 : vector<2x1024xi32>
    %c65535_i32_22 = arith.constant 65535 : i32
    %95 = vector.broadcast %c65535_i32_22 : i32 to vector<2x1024xi32>
    %96 = arith.andi %94, %95 : vector<2x1024xi32>
    %97 = arith.addi %79, %96 : vector<2x1024xi32>
    %c16_i32_23 = arith.constant 16 : i32
    %98 = vector.broadcast %c16_i32_23 : i32 to vector<2x1024xi32>
    %99 = arith.shrui %94, %98 : vector<2x1024xi32>
    %100 = arith.addi %97, %99 : vector<2x1024xi32>
    %c312172759_i32 = arith.constant 312172759 : i32
    %101 = vector.broadcast %c312172759_i32 : i32 to vector<2x1024xi32>
    %102 = arith.addi %15, %101 : vector<2x1024xi32>
    %c16_i32_24 = arith.constant 16 : i32
    %103 = vector.broadcast %c16_i32_24 : i32 to vector<2x1024xi32>
    %104 = arith.shrui %102, %103 : vector<2x1024xi32>
    %105 = arith.xori %102, %104 : vector<2x1024xi32>
    %c2146121005_i32_25 = arith.constant 2146121005 : i32
    %106 = vector.broadcast %c2146121005_i32_25 : i32 to vector<2x1024xi32>
    %107 = arith.muli %105, %106 : vector<2x1024xi32>
    %c15_i32_26 = arith.constant 15 : i32
    %108 = vector.broadcast %c15_i32_26 : i32 to vector<2x1024xi32>
    %109 = arith.shrui %107, %108 : vector<2x1024xi32>
    %110 = arith.xori %107, %109 : vector<2x1024xi32>
    %c-2073254261_i32_27 = arith.constant -2073254261 : i32
    %111 = vector.broadcast %c-2073254261_i32_27 : i32 to vector<2x1024xi32>
    %112 = arith.muli %110, %111 : vector<2x1024xi32>
    %c16_i32_28 = arith.constant 16 : i32
    %113 = vector.broadcast %c16_i32_28 : i32 to vector<2x1024xi32>
    %114 = arith.shrui %112, %113 : vector<2x1024xi32>
    %115 = arith.xori %112, %114 : vector<2x1024xi32>
    %c65535_i32_29 = arith.constant 65535 : i32
    %116 = vector.broadcast %c65535_i32_29 : i32 to vector<2x1024xi32>
    %117 = arith.andi %115, %116 : vector<2x1024xi32>
    %118 = arith.addi %100, %117 : vector<2x1024xi32>
    %c16_i32_30 = arith.constant 16 : i32
    %119 = vector.broadcast %c16_i32_30 : i32 to vector<2x1024xi32>
    %120 = arith.shrui %115, %119 : vector<2x1024xi32>
    %121 = arith.addi %118, %120 : vector<2x1024xi32>
    %c1975993970_i32 = arith.constant 1975993970 : i32
    %122 = vector.broadcast %c1975993970_i32 : i32 to vector<2x1024xi32>
    %123 = arith.addi %15, %122 : vector<2x1024xi32>
    %c16_i32_31 = arith.constant 16 : i32
    %124 = vector.broadcast %c16_i32_31 : i32 to vector<2x1024xi32>
    %125 = arith.shrui %123, %124 : vector<2x1024xi32>
    %126 = arith.xori %123, %125 : vector<2x1024xi32>
    %c2146121005_i32_32 = arith.constant 2146121005 : i32
    %127 = vector.broadcast %c2146121005_i32_32 : i32 to vector<2x1024xi32>
    %128 = arith.muli %126, %127 : vector<2x1024xi32>
    %c15_i32_33 = arith.constant 15 : i32
    %129 = vector.broadcast %c15_i32_33 : i32 to vector<2x1024xi32>
    %130 = arith.shrui %128, %129 : vector<2x1024xi32>
    %131 = arith.xori %128, %130 : vector<2x1024xi32>
    %c-2073254261_i32_34 = arith.constant -2073254261 : i32
    %132 = vector.broadcast %c-2073254261_i32_34 : i32 to vector<2x1024xi32>
    %133 = arith.muli %131, %132 : vector<2x1024xi32>
    %c16_i32_35 = arith.constant 16 : i32
    %134 = vector.broadcast %c16_i32_35 : i32 to vector<2x1024xi32>
    %135 = arith.shrui %133, %134 : vector<2x1024xi32>
    %136 = arith.xori %133, %135 : vector<2x1024xi32>
    %c65535_i32_36 = arith.constant 65535 : i32
    %137 = vector.broadcast %c65535_i32_36 : i32 to vector<2x1024xi32>
    %138 = arith.andi %136, %137 : vector<2x1024xi32>
    %139 = arith.addi %121, %138 : vector<2x1024xi32>
    %c16_i32_37 = arith.constant 16 : i32
    %140 = vector.broadcast %c16_i32_37 : i32 to vector<2x1024xi32>
    %141 = arith.shrui %136, %140 : vector<2x1024xi32>
    %142 = arith.addi %139, %141 : vector<2x1024xi32>
    %143 = arith.sitofp %142 : vector<2x1024xi32> to vector<2x1024xf32>
    %cst = arith.constant 3.932100e+05 : f32
    %144 = vector.broadcast %cst : f32 to vector<2x1024xf32>
    %145 = arith.subf %143, %144 : vector<2x1024xf32>
    %cst_38 = arith.constant 1.52587891E-5 : f32
    %146 = vector.broadcast %cst_38 : f32 to vector<2x1024xf32>
    %147 = arith.mulf %145, %146 : vector<2x1024xf32>
    %c0_39 = arith.constant 0 : index
    %c0_40 = arith.constant 0 : index
    %148 = vector.load %arg3[%c0_39, %c0_40] : memref<2x1024xf32, #tpu.memory_space<vmem>>, vector<2x1024xf32>
    %cst_41 = arith.constant 5.000000e-03 : f32
    %149 = vector.broadcast %cst_41 : f32 to vector<2x1024xf32>
    %150 = arith.mulf %147, %149 : vector<2x1024xf32>
    %151 = arith.addf %148, %150 : vector<2x1024xf32>
    %c0_42 = arith.constant 0 : index
    %c0_43 = arith.constant 0 : index
    %152 = vector.load %arg4[%c0_42, %c0_43] : memref<2x1024xf32, #tpu.memory_space<vmem>>, vector<2x1024xf32>
    tpu.vector_store %arg4[%c0_42, %c0_43], %151 {strides = array<i32>} : memref<2x1024xf32, #tpu.memory_space<vmem>>, vector<2x1024xf32>,
    return
  }
  func.func @transform_0(%arg0: i32, %arg1: i32, %arg2: memref<1xi32, #tpu.memory_space<smem>>) -> (i32, i32) {
    %c0_i32 = arith.constant 0 : i32
    return %arg0, %arg1 : i32, i32
  }
  func.func @transform_1(%arg0: i32, %arg1: i32, %arg2: memref<1xi32, #tpu.memory_space<smem>>) -> (i32, i32) {
    %c0_i32 = arith.constant 0 : i32
    return %arg0, %arg1 : i32, i32
  }
}

</mosaic_0001>

<bundles_post_ra>
// kernel: tpu_custom_call.1
= control target key start
LH: loop header
LB: loop body
LE: loop exit
PB: predicated region body
PF: predicated region fallthrough
CT: control target
= control target key end

     0   :  { %8 = vsyncpa [#allocation5], 0  ;;  %s1204_s0 = inlined_call_operand.<no memory space> [shape: s32[1], index: 0, kind: input, shape index: {}]   ;;  %s1205_s1 = inlined_call_operand.hbm [shape: f32[2,1024], index: 1, kind: input, shape index: {}]   ;;  %s1206_s2 = inlined_call_operand.hbm [shape: f32[2,1024], index: 2, kind: output, shape index: {}]  }
   0x1   :  { %9 = vsyncpa [#allocation6], 0  ;;  %s15_s11 = sshll.u32 %s1205_s1, 4  ;;  %s834_s12 = smov [#allocation4]   ;;  %s16_s11 = int_to_ptr.hbm [resolvable:$true] %s15_s11 }
   0x2   :  { %s17_s13 = sshll.u32 %s834_s12, 4  ;;  %s18_s13 = int_to_ptr.vmem [resolvable:$true] %s17_s13 }
   0x3   :  { %20 = dma.hbm_to_vmem [thread:$0]  %s16_s11, 256, %s18_s13, [#allocation5]  }
   0x4   :  { %830 = dma.done.wait [#allocation5], 256  }
   0x5   :  { %831 = vsyncadd [#allocation5], 4294967040  ;;  %v25_v0 = vlaneseq  ;;  %v67_v11 = vstv %s1204_s0  ;;  %vm740_vm0 = vcmask 1041408   ;;  %vm742_vm1 = vcmask 1045508   ;;  %s835_s0 = smov [#allocation7]   ;;  %s762_s18 = sshll.u32 %s1206_s2, 4  ;;  %s763_s18 = int_to_ptr.hbm [resolvable:$true] %s762_s18 }
   0x6   :  { %vm744_vm2 = vcmask 1043456   ;;  %s760_s15 = sshll.u32 %s835_s0, 4  ;;  %s761_s15 = int_to_ptr.vmem [resolvable:$true] %s760_s15 }
   0x7   :  { %v26_v1 = vshrl.u32 %v25_v0, 7  ;;  %v31_v2 = vand.u32 127, %v25_v0 }
   0x9   :  { %v32_v3 = vadd.s32 128, %v31_v2  ;;  %v33_v4 = vadd.s32 256, %v31_v2  ;;  %v34_v5 = vadd.s32 384, %v31_v2  ;;  %v35_v6 = vadd.s32 512, %v31_v2 }
   0xa   :  { %v36_v7 = vadd.s32 640, %v31_v2  ;;  %v37_v8 = vadd.s32 768, %v31_v2  ;;  %v38_v9 = vadd.s32 896, %v31_v2  ;;  %v49_v10 = vmul.u32 1024, %v26_v1 }
   0xc   :  { %v50_v12 = vadd.s32 %v49_v10, %v31_v2  ;;  %v51_v13 = vadd.s32 %v49_v10, %v32_v3  ;;  %v52_v14 = vadd.s32 %v49_v10, %v33_v4  ;;  %v53_v15 = vadd.s32 %v49_v10, %v34_v5 }
   0xd   :  { %v54_v16 = vadd.s32 %v49_v10, %v35_v6  ;;  %v55_v17 = vadd.s32 %v49_v10, %v36_v7  ;;  %v56_v18 = vadd.s32 %v49_v10, %v37_v8  ;;  %v57_v19 = vadd.s32 %v49_v10, %v38_v9 }
   0xe   :  { %v59_v20 = vmul.u32 2654435769, %v50_v12  ;;  %v60_v21 = vmul.u32 2654435769, %v51_v13  ;;  %v61_v22 = vmul.u32 2654435769, %v52_v14 }
   0xf   :  { %v62_v23 = vmul.u32 2654435769, %v53_v15  ;;  %v63_v24 = vmul.u32 2654435769, %v54_v16  ;;  %v64_v25 = vmul.u32 2654435769, %v55_v17 }
  0x10   :  { %v65_v26 = vmul.u32 2654435769, %v56_v18  ;;  %v66_v27 = vmul.u32 2654435769, %v57_v19  ;;  %v857_v28 = vadd.s32 %v67_v11, %v59_v20  ;;  %v859_v29 = vadd.s32 %v67_v11, %v60_v21 }
  0x11   :  { %v861_v30 = vadd.s32 %v67_v11, %v61_v22  ;;  %v863_v31 = vadd.s32 %v67_v11, %v62_v23  ;;  %v865_v32 = vadd.s32 %v67_v11, %v63_v24  ;;  %v867_v33 = vadd.s32 %v67_v11, %v64_v25 }
  0x12   :  { %v869_v34 = vadd.s32 %v67_v11, %v65_v26  ;;  %v871_v35 = vadd.s32 %v67_v11, %v66_v27  ;;  %v76_v36 = vadd.s32 2246822507, %v857_v28  ;;  %v77_v37 = vadd.s32 2246822507, %v859_v29 }
  0x13   :  { %v78_v38 = vadd.s32 2246822507, %v861_v30  ;;  %v79_v39 = vadd.s32 2246822507, %v863_v31  ;;  %v80_v40 = vadd.s32 2246822507, %v865_v32 }
  0x14   :  { %v81_v41 = vadd.s32 2246822507, %v867_v33  ;;  %v82_v42 = vadd.s32 2246822507, %v869_v34  ;;  %v83_v43 = vadd.s32 2246822507, %v871_v35 }
  0x15   :  { %v84_v44 = vshrl.u32 %v76_v36, 16  ;;  %v85_v45 = vshrl.u32 %v77_v37, 16  ;;  %v86_v46 = vshrl.u32 %v78_v38, 16  ;;  %v87_v47 = vshrl.u32 %v79_v39, 16 }
  0x16   :  { %v88_v48 = vshrl.u32 %v80_v40, 16  ;;  %v89_v49 = vshrl.u32 %v81_v41, 16  ;;  %v90_v50 = vshrl.u32 %v82_v42, 16  ;;  %v91_v51 = vshrl.u32 %v83_v43, 16 }
  0x17   :  { %v92_v52 = vxor.u32 %v84_v44, %v76_v36  ;;  %v93_v53 = vxor.u32 %v85_v45, %v77_v37  ;;  %v94_v54 = vxor.u32 %v86_v46, %v78_v38  ;;  %v95_v55 = vxor.u32 %v87_v47, %v79_v39 }
  0x18   :  { %v96_v56 = vxor.u32 %v88_v48, %v80_v40  ;;  %v97_v57 = vxor.u32 %v89_v49, %v81_v41  ;;  %v98_v58 = vxor.u32 %v90_v50, %v82_v42  ;;  %v99_v59 = vxor.u32 %v91_v51, %v83_v43 }
  0x19   :  { %v100_v60 = vmul.u32 2146121005, %v92_v52  ;;  %v101_v61 = vmul.u32 2146121005, %v93_v53  ;;  %v102_v62 = vmul.u32 2146121005, %v94_v54 }
  0x1a   :  { %v103_v63 = vmul.u32 2146121005, %v95_v55  ;;  %v104_v0 = vmul.u32 2146121005, %v96_v56  ;;  %v105_v1 = vmul.u32 2146121005, %v97_v57 }
  0x1b   :  { %v106_v2 = vmul.u32 2146121005, %v98_v58  ;;  %v107_v3 = vmul.u32 2146121005, %v99_v59  ;;  %v108_v4 = vshrl.u32 %v100_v60, 15  ;;  %v109_v5 = vshrl.u32 %v101_v61, 15 }
  0x1c   :  { %v110_v6 = vshrl.u32 %v102_v62, 15  ;;  %v111_v7 = vshrl.u32 %v103_v63, 15  ;;  %v112_v8 = vshrl.u32 %v104_v0, 15  ;;  %v113_v9 = vshrl.u32 %v105_v1, 15 }
  0x1d   :  { %v114_v10 = vshrl.u32 %v106_v2, 15  ;;  %v115_v11 = vshrl.u32 %v107_v3, 15  ;;  %v116_v12 = vxor.u32 %v108_v4, %v100_v60  ;;  %v117_v13 = vxor.u32 %v109_v5, %v101_v61 }
  0x1e   :  { %v118_v14 = vxor.u32 %v110_v6, %v102_v62  ;;  %v119_v15 = vxor.u32 %v111_v7, %v103_v63  ;;  %v120_v16 = vxor.u32 %v112_v8, %v104_v0  ;;  %v121_v17 = vxor.u32 %v113_v9, %v105_v1 }
  0x1f   :  { %v122_v18 = vxor.u32 %v114_v10, %v106_v2  ;;  %v123_v19 = vxor.u32 %v115_v11, %v107_v3  ;;  %v124_v20 = vmul.u32 2221713035, %v116_v12  ;;  %v125_v21 = vmul.u32 2221713035, %v117_v13 }
  0x20   :  { %v126_v22 = vmul.u32 2221713035, %v118_v14  ;;  %v127_v23 = vmul.u32 2221713035, %v119_v15  ;;  %v128_v24 = vmul.u32 2221713035, %v120_v16 }
  0x21   :  { %v129_v25 = vmul.u32 2221713035, %v121_v17  ;;  %v130_v26 = vmul.u32 2221713035, %v122_v18  ;;  %v131_v27 = vmul.u32 2221713035, %v123_v19 }
  0x22   :  { %v132_v36 = vshrl.u32 %v124_v20, 16  ;;  %v133_v37 = vshrl.u32 %v125_v21, 16  ;;  %v134_v38 = vshrl.u32 %v126_v22, 16  ;;  %v135_v39 = vshrl.u32 %v127_v23, 16 }
  0x23   :  { %v136_v40 = vshrl.u32 %v128_v24, 16  ;;  %v137_v41 = vshrl.u32 %v129_v25, 16  ;;  %v138_v42 = vshrl.u32 %v130_v26, 16  ;;  %v139_v43 = vshrl.u32 %v131_v27, 16 }
  0x24   :  { %v881_v44 = vxor.u32 %v132_v36, %v124_v20  ;;  %v883_v45 = vxor.u32 %v133_v37, %v125_v21  ;;  %v885_v46 = vxor.u32 %v134_v38, %v126_v22  ;;  %v887_v47 = vxor.u32 %v135_v39, %v127_v23 }
  0x25   :  { %v889_v48 = vxor.u32 %v136_v40, %v128_v24  ;;  %v891_v49 = vxor.u32 %v137_v41, %v129_v25  ;;  %v893_v50 = vxor.u32 %v138_v42, %v130_v26  ;;  %v895_v51 = vxor.u32 %v139_v43, %v131_v27 }
  0x26   :  { %v148_v52 = vand.u32 65535, %v881_v44  ;;  %v149_v53 = vand.u32 65535, %v883_v45  ;;  %v150_v54 = vand.u32 65535, %v885_v46  ;;  %v151_v55 = vand.u32 65535, %v887_v47 }
  0x27   :  { %v152_v56 = vand.u32 65535, %v889_v48  ;;  %v153_v57 = vand.u32 65535, %v891_v49  ;;  %v154_v58 = vand.u32 65535, %v893_v50  ;;  %v155_v59 = vand.u32 65535, %v895_v51 }
  0x28   :  { %v156_v60 = vshrl.u32 %v881_v44, 16  ;;  %v157_v61 = vshrl.u32 %v883_v45, 16  ;;  %v172_v62 = vadd.s32 3910643718, %v857_v28  ;;  %v173_v63 = vadd.s32 3910643718, %v859_v29 }
  0x29   :  { %v174_v0 = vadd.s32 3910643718, %v861_v30  ;;  %v175_v1 = vadd.s32 3910643718, %v863_v31  ;;  %v176_v2 = vadd.s32 3910643718, %v865_v32 }
  0x2a   :  { %v177_v3 = vadd.s32 3910643718, %v867_v33  ;;  %v178_v4 = vadd.s32 3910643718, %v869_v34  ;;  %v179_v5 = vadd.s32 3910643718, %v871_v35 }
  0x2b   :  { %v180_v6 = vshrl.u32 %v172_v62, 16  ;;  %v181_v7 = vshrl.u32 %v173_v63, 16  ;;  %v182_v8 = vshrl.u32 %v174_v0, 16  ;;  %v183_v9 = vshrl.u32 %v175_v1, 16 }
  0x2c   :  { %v184_v10 = vshrl.u32 %v176_v2, 16  ;;  %v185_v11 = vshrl.u32 %v177_v3, 16  ;;  %v186_v12 = vshrl.u32 %v178_v4, 16  ;;  %v187_v13 = vshrl.u32 %v179_v5, 16 }
  0x2d   :  { %v188_v14 = vxor.u32 %v180_v6, %v172_v62  ;;  %v189_v15 = vxor.u32 %v181_v7, %v173_v63  ;;  %v190_v16 = vxor.u32 %v182_v8, %v174_v0  ;;  %v191_v17 = vxor.u32 %v183_v9, %v175_v1 }
  0x2e   :  { %v192_v18 = vxor.u32 %v184_v10, %v176_v2  ;;  %v193_v19 = vxor.u32 %v185_v11, %v177_v3  ;;  %v194_v20 = vxor.u32 %v186_v12, %v178_v4  ;;  %v195_v21 = vxor.u32 %v187_v13, %v179_v5 }
  0x2f   :  { %v196_v22 = vmul.u32 2146121005, %v188_v14  ;;  %v197_v23 = vmul.u32 2146121005, %v189_v15  ;;  %v198_v24 = vmul.u32 2146121005, %v190_v16 }
  0x30   :  { %v199_v25 = vmul.u32 2146121005, %v191_v17  ;;  %v200_v26 = vmul.u32 2146121005, %v192_v18  ;;  %v201_v27 = vmul.u32 2146121005, %v193_v19 }
  0x31   :  { %v202_v36 = vmul.u32 2146121005, %v194_v20  ;;  %v203_v37 = vmul.u32 2146121005, %v195_v21  ;;  %v204_v38 = vshrl.u32 %v196_v22, 15  ;;  %v205_v39 = vshrl.u32 %v197_v23, 15 }
  0x32   :  { %v206_v40 = vshrl.u32 %v198_v24, 15  ;;  %v207_v41 = vshrl.u32 %v199_v25, 15  ;;  %v208_v42 = vshrl.u32 %v200_v26, 15  ;;  %v209_v43 = vshrl.u32 %v201_v27, 15 }
  0x33   :  { %v210_v62 = vshrl.u32 %v202_v36, 15  ;;  %v211_v63 = vshrl.u32 %v203_v37, 15  ;;  %v212_v0 = vxor.u32 %v204_v38, %v196_v22  ;;  %v213_v1 = vxor.u32 %v205_v39, %v197_v23 }
  0x34   :  { %v214_v2 = vxor.u32 %v206_v40, %v198_v24  ;;  %v215_v3 = vxor.u32 %v207_v41, %v199_v25  ;;  %v216_v4 = vxor.u32 %v208_v42, %v200_v26  ;;  %v217_v5 = vxor.u32 %v209_v43, %v201_v27 }
  0x35   :  { %v218_v6 = vxor.u32 %v210_v62, %v202_v36  ;;  %v219_v7 = vxor.u32 %v211_v63, %v203_v37  ;;  %v220_v8 = vmul.u32 2221713035, %v212_v0  ;;  %v221_v9 = vmul.u32 2221713035, %v213_v1 }
  0x36   :  { %v222_v10 = vmul.u32 2221713035, %v214_v2  ;;  %v223_v11 = vmul.u32 2221713035, %v215_v3  ;;  %v224_v12 = vmul.u32 2221713035, %v216_v4  ;;  %v164_v0 = vadd.s32 %v156_v60, %v148_v52 }
  0x37   :  { %v225_v13 = vmul.u32 2221713035, %v217_v5  ;;  %v226_v14 = vmul.u32 2221713035, %v218_v6  ;;  %v227_v15 = vmul.u32 2221713035, %v219_v7  ;;  %v165_v1 = vadd.s32 %v157_v61, %v149_v53 }
  0x38   :  { %v228_v16 = vshrl.u32 %v220_v8, 16  ;;  %v229_v17 = vshrl.u32 %v221_v9, 16  ;;  %v230_v18 = vshrl.u32 %v222_v10, 16  ;;  %v231_v19 = vshrl.u32 %v223_v11, 16 }
  0x39   :  { %v232_v20 = vshrl.u32 %v224_v12, 16  ;;  %v233_v21 = vshrl.u32 %v225_v13, 16  ;;  %v234_v22 = vshrl.u32 %v226_v14, 16  ;;  %v235_v23 = vshrl.u32 %v227_v15, 16 }
  0x3a   :  { %v915_v24 = vxor.u32 %v228_v16, %v220_v8  ;;  %v917_v25 = vxor.u32 %v229_v17, %v221_v9  ;;  %v158_v26 = vshrl.u32 %v885_v46, 16  ;;  %v159_v27 = vshrl.u32 %v887_v47, 16 }
  0x3b   :  { %v160_v36 = vshrl.u32 %v889_v48, 16  ;;  %v161_v37 = vshrl.u32 %v891_v49, 16  ;;  %v162_v38 = vshrl.u32 %v893_v50, 16  ;;  %v163_v39 = vshrl.u32 %v895_v51, 16 }
  0x3c   :  { %v925_v40 = vxor.u32 %v230_v18, %v222_v10  ;;  %v927_v41 = vxor.u32 %v231_v19, %v223_v11  ;;  %v929_v42 = vxor.u32 %v232_v20, %v224_v12  ;;  %v931_v43 = vxor.u32 %v233_v21, %v225_v13 }
  0x3d   :  { %v933_v62 = vxor.u32 %v234_v22, %v226_v14  ;;  %v935_v63 = vxor.u32 %v235_v23, %v227_v15  ;;  %v244_v2 = vand.u32 65535, %v915_v24  ;;  %v245_v3 = vand.u32 65535, %v917_v25 }
  0x3e   :  { %v166_v4 = vadd.s32 %v158_v26, %v150_v54  ;;  %v167_v5 = vadd.s32 %v159_v27, %v151_v55  ;;  %v168_v6 = vadd.s32 %v160_v36, %v152_v56  ;;  %v169_v44 = vadd.s32 %v161_v37, %v153_v57 }
  0x3f   :  { %v957_v45 = vadd.s32 %v162_v38, %v154_v58  ;;  %v961_v52 = vadd.s32 %v163_v39, %v155_v59  ;;  %v246_v46 = vand.u32 65535, %v925_v40  ;;  %v247_v53 = vand.u32 65535, %v927_v41 }
  0x40   :  { %v248_v47 = vand.u32 65535, %v929_v42  ;;  %v249_v48 = vand.u32 65535, %v931_v43  ;;  %v250_v54 = vand.u32 65535, %v933_v62  ;;  %v251_v49 = vand.u32 65535, %v935_v63 }
  0x41   :  { %v969_v55 = vadd.s32 %v244_v2, %v164_v0  ;;  %v971_v50 = vadd.s32 %v245_v3, %v165_v1  ;;  %v276_v8 = vadd.s32 1279497633, %v857_v28  ;;  %v277_v9 = vadd.s32 1279497633, %v859_v29 }
  0x42   :  { %v983_v10 = vadd.s32 %v246_v46, %v166_v4  ;;  %v278_v11 = vadd.s32 1279497633, %v861_v30  ;;  %v279_v12 = vadd.s32 1279497633, %v863_v31  ;;  %v280_v13 = vadd.s32 1279497633, %v865_v32 }
  0x43   :  { %v988_v14 = vadd.s32 %v247_v53, %v167_v5  ;;  %v281_v15 = vadd.s32 1279497633, %v867_v33  ;;  %v282_v16 = vadd.s32 1279497633, %v869_v34  ;;  %v283_v17 = vadd.s32 1279497633, %v871_v35 }
  0x44   :  { %v284_v18 = vshrl.u32 %v276_v8, 16  ;;  %v285_v19 = vshrl.u32 %v277_v9, 16  ;;  %v286_v20 = vshrl.u32 %v278_v11, 16  ;;  %v287_v21 = vshrl.u32 %v279_v12, 16 }
  0x45   :  { %v288_v22 = vshrl.u32 %v280_v13, 16  ;;  %v289_v23 = vshrl.u32 %v281_v15, 16  ;;  %v290_v26 = vshrl.u32 %v282_v16, 16  ;;  %v291_v27 = vshrl.u32 %v283_v17, 16 }
  0x46   :  { %v292_v36 = vxor.u32 %v284_v18, %v276_v8  ;;  %v293_v37 = vxor.u32 %v285_v19, %v277_v9  ;;  %v294_v38 = vxor.u32 %v286_v20, %v278_v11  ;;  %v295_v39 = vxor.u32 %v287_v21, %v279_v12 }
  0x47   :  { %v296_v0 = vxor.u32 %v288_v22, %v280_v13  ;;  %v297_v1 = vxor.u32 %v289_v23, %v281_v15  ;;  %v298_v2 = vxor.u32 %v290_v26, %v282_v16  ;;  %v299_v3 = vxor.u32 %v291_v27, %v283_v17 }
  0x48   :  { %v256_v4 = vadd.s32 %v248_v47, %v168_v6  ;;  %v300_v5 = vmul.u32 2146121005, %v292_v36  ;;  %v301_v46 = vmul.u32 2146121005, %v293_v37  ;;  %v302_v53 = vmul.u32 2146121005, %v294_v38 }
  0x49   :  { %v257_v7 = vadd.s32 %v249_v48, %v169_v44  ;;  %v303_v61 = vmul.u32 2146121005, %v295_v39  ;;  %v304_v60 = vmul.u32 2146121005, %v296_v0  ;;  %v305_v59 = vmul.u32 2146121005, %v297_v1 }
  0x4a   :  { %v306_v58 = vmul.u32 2146121005, %v298_v2  ;;  %v307_v57 = vmul.u32 2146121005, %v299_v3  ;;  %v308_v56 = vshrl.u32 %v300_v5, 15  ;;  %v309_v51 = vshrl.u32 %v301_v46, 15 }
  0x4b   :  { %v310_v8 = vshrl.u32 %v302_v53, 15  ;;  %v311_v9 = vshrl.u32 %v303_v61, 15  ;;  %v312_v11 = vshrl.u32 %v304_v60, 15  ;;  %v313_v12 = vshrl.u32 %v305_v59, 15 }
  0x4c   :  { %v314_v13 = vshrl.u32 %v306_v58, 15  ;;  %v315_v15 = vshrl.u32 %v307_v57, 15  ;;  %v316_v16 = vxor.u32 %v308_v56, %v300_v5  ;;  %v317_v17 = vxor.u32 %v309_v51, %v301_v46 }
  0x4d   :  { %v318_v6 = vxor.u32 %v310_v8, %v302_v53  ;;  %v319_v47 = vxor.u32 %v311_v9, %v303_v61  ;;  %v320_v18 = vxor.u32 %v312_v11, %v304_v60  ;;  %v321_v19 = vxor.u32 %v313_v12, %v305_v59 }
  0x4e   :  { %v322_v44 = vxor.u32 %v314_v13, %v306_v58  ;;  %v323_v48 = vxor.u32 %v315_v15, %v307_v57  ;;  %v324_v20 = vmul.u32 2221713035, %v316_v16  ;;  %v325_v21 = vmul.u32 2221713035, %v317_v17 }
  0x4f   :  { %v258_v22 = vadd.s32 %v250_v54, %v957_v45  ;;  %v326_v23 = vmul.u32 2221713035, %v318_v6  ;;  %v327_v26 = vmul.u32 2221713035, %v319_v47  ;;  %v328_v27 = vmul.u32 2221713035, %v320_v18 }
  0x50   :  { %v259_v56 = vadd.s32 %v251_v49, %v961_v52  ;;  %v329_v51 = vmul.u32 2221713035, %v321_v19  ;;  %v330_v36 = vmul.u32 2221713035, %v322_v44  ;;  %v331_v61 = vmul.u32 2221713035, %v323_v48 }
  0x51   :  { %v332_v60 = vshrl.u32 %v324_v20, 16  ;;  %v333_v59 = vshrl.u32 %v325_v21, 16  ;;  %v334_v58 = vshrl.u32 %v326_v23, 16  ;;  %v335_v57 = vshrl.u32 %v327_v26, 16 }
  0x52   :  { %v336_v37 = vshrl.u32 %v328_v27, 16  ;;  %v337_v38 = vshrl.u32 %v329_v51, 16  ;;  %v338_v39 = vshrl.u32 %v330_v36, 16  ;;  %v339_v0 = vshrl.u32 %v331_v61, 16 }
  0x53   :  { %v999_v1 = vxor.u32 %v332_v60, %v324_v20  ;;  %v1001_v45 = vxor.u32 %v333_v59, %v325_v21  ;;  %v1003_v54 = vxor.u32 %v334_v58, %v326_v23  ;;  %v1005_v2 = vxor.u32 %v335_v57, %v327_v26 }
  0x54   :  { %v1207_v52 = vshrl.u32 %v915_v24, 16  ;;  %v1208_v3 = vshrl.u32 %v917_v25, 16  ;;  %v1209_v46 = vshrl.u32 %v925_v40, 16  ;;  %v1210_v8 = vshrl.u32 %v927_v41, 16 }
  0x55   :  { %v1019_v11 = vxor.u32 %v336_v37, %v328_v27  ;;  %v1021_v12 = vxor.u32 %v337_v38, %v329_v51  ;;  %v1023_v13 = vxor.u32 %v338_v39, %v330_v36  ;;  %v1025_v24 = vxor.u32 %v339_v0, %v331_v61 }
  0x56   :  { %v268_v49 = vadd.s32 %v1207_v52, %v969_v55  ;;  %v269_v5 = vadd.s32 %v1208_v3, %v971_v50  ;;  %v270_v53 = vadd.s32 %v1209_v46, %v983_v10  ;;  %v271_v9 = vadd.s32 %v1210_v8, %v988_v14 }
  0x57   :  { %v348_v55 = vand.u32 65535, %v999_v1  ;;  %v349_v25 = vand.u32 65535, %v1001_v45  ;;  %v350_v50 = vand.u32 65535, %v1003_v54  ;;  %v351_v40 = vand.u32 65535, %v1005_v2 }
  0x58   :  { %v1211_v10 = vshrl.u32 %v929_v42, 16  ;;  %v1212_v14 = vshrl.u32 %v931_v43, 16  ;;  %v1213_v16 = vshrl.u32 %v933_v62, 16  ;;  %v1214_v6 = vshrl.u32 %v935_v63, 16 }
  0x59   :  { %v352_v18 = vand.u32 65535, %v1019_v11  ;;  %v353_v19 = vand.u32 65535, %v1021_v12  ;;  %v354_v44 = vand.u32 65535, %v1023_v13  ;;  %v355_v48 = vand.u32 65535, %v1025_v24 }
  0x5a   :  { %v272_v41 = vadd.s32 %v1211_v10, %v256_v4  ;;  %v273_v15 = vadd.s32 %v1212_v14, %v257_v7  ;;  %v274_v17 = vadd.s32 %v1213_v16, %v258_v22  ;;  %v275_v47 = vadd.s32 %v1214_v6, %v259_v56 }
  0x5b   :  { %v1043_v20 = vadd.s32 %v348_v55, %v268_v49  ;;  %v1045_v42 = vadd.s32 %v349_v25, %v269_v5  ;;  %v1047_v43 = vadd.s32 %v350_v50, %v270_v53  ;;  %v1049_v7 = vadd.s32 %v351_v40, %v271_v9 }
  0x5c   :  { %v364_v62 = vshrl.u32 %v999_v1, 16  ;;  %v365_v63 = vshrl.u32 %v1001_v45, 16  ;;  %v366_v4 = vshrl.u32 %v1003_v54, 16  ;;  %v1059_v56 = vadd.s32 %v352_v18, %v272_v41 }
  0x5d   :  { %v380_v51 = vadd.s32 2943318844, %v857_v28  ;;  %v381_v36 = vadd.s32 2943318844, %v859_v29  ;;  %v382_v61 = vadd.s32 2943318844, %v861_v30  ;;  %v1064_v60 = vadd.s32 %v353_v19, %v273_v15 }
  0x5e   :  { %v383_v59 = vadd.s32 2943318844, %v863_v31  ;;  %v384_v58 = vadd.s32 2943318844, %v865_v32  ;;  %v385_v57 = vadd.s32 2943318844, %v867_v33  ;;  %v362_v15 = vadd.s32 %v354_v44, %v274_v17 }
  0x5f   :  { %v386_v37 = vadd.s32 2943318844, %v869_v34  ;;  %v387_v38 = vadd.s32 2943318844, %v871_v35  ;;  %v388_v39 = vshrl.u32 %v380_v51, 16  ;;  %v389_v0 = vshrl.u32 %v381_v36, 16 }
  0x60   :  { %v390_v1 = vshrl.u32 %v382_v61, 16  ;;  %v391_v52 = vshrl.u32 %v383_v59, 16  ;;  %v392_v49 = vshrl.u32 %v384_v58, 16  ;;  %v393_v3 = vshrl.u32 %v385_v57, 16 }
  0x61   :  { %v394_v5 = vshrl.u32 %v386_v37, 16  ;;  %v395_v46 = vshrl.u32 %v387_v38, 16  ;;  %v396_v53 = vxor.u32 %v388_v39, %v380_v51  ;;  %v397_v8 = vxor.u32 %v389_v0, %v381_v36 }
  0x62   :  { %v398_v9 = vxor.u32 %v390_v1, %v382_v61  ;;  %v399_v55 = vxor.u32 %v391_v52, %v383_v59  ;;  %v400_v25 = vxor.u32 %v392_v49, %v384_v58  ;;  %v401_v50 = vxor.u32 %v393_v3, %v385_v57 }
  0x63   :  { %v402_v40 = vxor.u32 %v394_v5, %v386_v37  ;;  %v403_v10 = vxor.u32 %v395_v46, %v387_v38  ;;  %v404_v41 = vmul.u32 2146121005, %v396_v53  ;;  %v405_v14 = vmul.u32 2146121005, %v397_v8 }
  0x64   :  { %v406_v16 = vmul.u32 2146121005, %v398_v9  ;;  %v407_v6 = vmul.u32 2146121005, %v399_v55  ;;  %v408_v18 = vmul.u32 2146121005, %v400_v25  ;;  %v363_v19 = vadd.s32 %v355_v48, %v275_v47 }
  0x65   :  { %v409_v27 = vmul.u32 2146121005, %v401_v50  ;;  %v410_v26 = vmul.u32 2146121005, %v402_v40  ;;  %v411_v23 = vmul.u32 2146121005, %v403_v10  ;;  %v372_v47 = vadd.s32 %v364_v62, %v1043_v20 }
  0x66   :  { %v412_v22 = vshrl.u32 %v404_v41, 15  ;;  %v413_v21 = vshrl.u32 %v405_v14, 15  ;;  %v414_v51 = vshrl.u32 %v406_v16, 15  ;;  %v415_v36 = vshrl.u32 %v407_v6, 15 }
  0x67   :  { %v416_v61 = vshrl.u32 %v408_v18, 15  ;;  %v417_v59 = vshrl.u32 %v409_v27, 15  ;;  %v418_v58 = vshrl.u32 %v410_v26, 15  ;;  %v419_v57 = vshrl.u32 %v411_v23, 15 }
  0x68   :  { %v420_v37 = vxor.u32 %v412_v22, %v404_v41  ;;  %v421_v38 = vxor.u32 %v413_v21, %v405_v14  ;;  %v422_v39 = vxor.u32 %v414_v51, %v406_v16  ;;  %v423_v0 = vxor.u32 %v415_v36, %v407_v6 }
  0x69   :  { %v424_v17 = vxor.u32 %v416_v61, %v408_v18  ;;  %v425_v44 = vxor.u32 %v417_v59, %v409_v27  ;;  %v426_v1 = vxor.u32 %v418_v58, %v410_v26  ;;  %v427_v52 = vxor.u32 %v419_v57, %v411_v23 }
  0x6a   :  { %v428_v48 = vmul.u32 2221713035, %v420_v37  ;;  %v429_v49 = vmul.u32 2221713035, %v421_v38  ;;  %v430_v3 = vmul.u32 2221713035, %v422_v39  ;;  %v373_v5 = vadd.s32 %v365_v63, %v1045_v42 }
  0x6b   :  { %v431_v46 = vmul.u32 2221713035, %v423_v0  ;;  %v432_v53 = vmul.u32 2221713035, %v424_v17  ;;  %v433_v8 = vmul.u32 2221713035, %v425_v44  ;;  %v374_v41 = vadd.s32 %v366_v4, %v1047_v43 }
  0x6c   :  { %v434_v22 = vmul.u32 2221713035, %v426_v1  ;;  %v435_v21 = vmul.u32 2221713035, %v427_v52  ;;  %v436_v9 = vshrl.u32 %v428_v48, 16  ;;  %v437_v55 = vshrl.u32 %v429_v49, 16 }
  0x6d   :  { %v438_v25 = vshrl.u32 %v430_v3, 16  ;;  %v439_v27 = vshrl.u32 %v431_v46, 16  ;;  %v440_v26 = vshrl.u32 %v432_v53, 16  ;;  %v441_v23 = vshrl.u32 %v433_v8, 16 }
  0x6e   :  { %v442_v50 = vshrl.u32 %v434_v22, 16  ;;  %v443_v20 = vshrl.u32 %v435_v21, 16  ;;  %v1075_v62 = vxor.u32 %v436_v9, %v428_v48  ;;  %v1077_v40 = vxor.u32 %v437_v55, %v429_v49 }
  0x6f   :  { %v1079_v10 = vxor.u32 %v438_v25, %v430_v3  ;;  %v1081_v45 = vxor.u32 %v439_v27, %v431_v46  ;;  %v1083_v42 = vxor.u32 %v440_v26, %v432_v53  ;;  %v1085_v63 = vxor.u32 %v441_v23, %v433_v8 }
  0x70   :  { %v1215_v14 = vshrl.u32 %v1005_v2, 16  ;;  %v1093_v6 = vxor.u32 %v442_v50, %v434_v22  ;;  %v1095_v18 = vxor.u32 %v443_v20, %v435_v21  ;;  %v452_v51 = vand.u32 65535, %v1075_v62 }
  0x71   :  { %v453_v36 = vand.u32 65535, %v1077_v40  ;;  %v454_v61 = vand.u32 65535, %v1079_v10  ;;  %v455_v59 = vand.u32 65535, %v1081_v45  ;;  %v1216_v54 = vshrl.u32 %v1019_v11, 16 }
  0x72   :  { %v375_v16 = vadd.s32 %v1215_v14, %v1049_v7  ;;  %v1217_v2 = vshrl.u32 %v1021_v12, 16  ;;  %v456_v4 = vand.u32 65535, %v1083_v42  ;;  %v457_v58 = vand.u32 65535, %v1085_v63 }
  0x73   :  { %v376_v43 = vadd.s32 %v1216_v54, %v1059_v56  ;;  %v1218_v57 = vshrl.u32 %v1023_v13, 16  ;;  %v1219_v38 = vshrl.u32 %v1025_v24, 16  ;;  %v458_v0 = vand.u32 65535, %v1093_v6 }
  0x74   :  { %v377_v7 = vadd.s32 %v1217_v2, %v1064_v60  ;;  %v459_v17 = vand.u32 65535, %v1095_v18  ;;  %v460_v11 = vadd.s32 %v452_v51, %v372_v47  ;;  %v461_v56 = vadd.s32 %v453_v36, %v373_v5 }
  0x75   :  { %v378_v37 = vadd.s32 %v1218_v57, %v362_v15  ;;  %v379_v39 = vadd.s32 %v1219_v38, %v363_v19  ;;  %v1115_v44 = vadd.s32 %v454_v61, %v374_v41  ;;  %v1117_v12 = vadd.s32 %v455_v59, %v375_v16 }
  0x76   :  { %v1119_v60 = vadd.s32 %v456_v4, %v376_v43  ;;  %v1121_v1 = vadd.s32 %v457_v58, %v377_v7  ;;  %v468_v13 = vshrl.u32 %v1075_v62, 16  ;;  %v469_v15 = vshrl.u32 %v1077_v40, 16 }
  0x77   :  { %v470_v24 = vshrl.u32 %v1079_v10, 16  ;;  %v471_v19 = vshrl.u32 %v1081_v45, 16  ;;  %v472_v52 = vshrl.u32 %v1083_v42, 16  ;;  %v473_v47 = vshrl.u32 %v1085_v63, 16 }
  0x78   :  { %v474_v48 = vshrl.u32 %v1093_v6, 16  ;;  %v475_v49 = vshrl.u32 %v1095_v18, 16  ;;  %v484_v3 = vadd.s32 312172759, %v857_v28  ;;  %v485_v5 = vadd.s32 312172759, %v859_v29 }
  0x79   :  { %v1133_v46 = vadd.s32 %v458_v0, %v378_v37  ;;  %v486_v53 = vadd.s32 312172759, %v861_v30  ;;  %v487_v8 = vadd.s32 312172759, %v863_v31  ;;  %v488_v22 = vadd.s32 312172759, %v865_v32 }
  0x7a   :  { %v1138_v21 = vadd.s32 %v459_v17, %v379_v39  ;;  %v489_v9 = vadd.s32 312172759, %v867_v33  ;;  %v490_v55 = vadd.s32 312172759, %v869_v34  ;;  %v491_v25 = vadd.s32 312172759, %v871_v35 }
  0x7b   :  { %v492_v27 = vshrl.u32 %v484_v3, 16  ;;  %v493_v26 = vshrl.u32 %v485_v5, 16  ;;  %v494_v23 = vshrl.u32 %v486_v53, 16  ;;  %v495_v50 = vshrl.u32 %v487_v8, 16 }
  0x7c   :  { %v496_v20 = vshrl.u32 %v488_v22, 16  ;;  %v497_v62 = vshrl.u32 %v489_v9, 16  ;;  %v498_v40 = vshrl.u32 %v490_v55, 16  ;;  %v499_v10 = vshrl.u32 %v491_v25, 16 }
  0x7d   :  { %v500_v41 = vxor.u32 %v492_v27, %v484_v3  ;;  %v501_v14 = vxor.u32 %v493_v26, %v485_v5  ;;  %v502_v16 = vxor.u32 %v494_v23, %v486_v53  ;;  %v503_v51 = vxor.u32 %v495_v50, %v487_v8 }
  0x7e   :  { %v504_v36 = vxor.u32 %v496_v20, %v488_v22  ;;  %v505_v61 = vxor.u32 %v497_v62, %v489_v9  ;;  %v506_v59 = vxor.u32 %v498_v40, %v490_v55  ;;  %v507_v54 = vxor.u32 %v499_v10, %v491_v25 }
  0x7f   :  { %v1143_v43 = vadd.s32 %v468_v13, %v460_v11  ;;  %v508_v2 = vmul.u32 2146121005, %v500_v41  ;;  %v509_v7 = vmul.u32 2146121005, %v501_v14  ;;  %v510_v4 = vmul.u32 2146121005, %v502_v16 }
  0x80   :  { %v477_v58 = vadd.s32 %v469_v15, %v461_v56  ;;  %v511_v57 = vmul.u32 2146121005, %v503_v51  ;;  %v512_v37 = vmul.u32 2146121005, %v504_v36  ;;  %v513_v38 = vmul.u32 2146121005, %v505_v61 }
  0x81   :  { %v514_v39 = vmul.u32 2146121005, %v506_v59  ;;  %v515_v0 = vmul.u32 2146121005, %v507_v54  ;;  %v516_v17 = vshrl.u32 %v508_v2, 15  ;;  %v517_v3 = vshrl.u32 %v509_v7, 15 }
  0x82   :  { %v518_v5 = vshrl.u32 %v510_v4, 15  ;;  %v519_v53 = vshrl.u32 %v511_v57, 15  ;;  %v520_v8 = vshrl.u32 %v512_v37, 15  ;;  %v521_v22 = vshrl.u32 %v513_v38, 15 }
  0x83   :  { %v522_v9 = vshrl.u32 %v514_v39, 15  ;;  %v523_v55 = vshrl.u32 %v515_v0, 15  ;;  %v524_v25 = vxor.u32 %v516_v17, %v508_v2  ;;  %v525_v11 = vxor.u32 %v517_v3, %v509_v7 }
  0x84   :  { %v526_v13 = vxor.u32 %v518_v5, %v510_v4  ;;  %v527_v27 = vxor.u32 %v519_v53, %v511_v57  ;;  %v528_v26 = vxor.u32 %v520_v8, %v512_v37  ;;  %v529_v23 = vxor.u32 %v521_v22, %v513_v38 }
  0x85   :  { %v530_v56 = vxor.u32 %v522_v9, %v514_v39  ;;  %v531_v15 = vxor.u32 %v523_v55, %v515_v0  ;;  %v532_v50 = vmul.u32 2221713035, %v524_v25  ;;  %v533_v20 = vmul.u32 2221713035, %v525_v11 }
  0x86   :  { %v478_v62 = vadd.s32 %v470_v24, %v1115_v44  ;;  %v534_v40 = vmul.u32 2221713035, %v526_v13  ;;  %v535_v10 = vmul.u32 2221713035, %v527_v27  ;;  %v536_v41 = vmul.u32 2221713035, %v528_v26 }
  0x87   :  { %v479_v14 = vadd.s32 %v471_v19, %v1117_v12  ;;  %v537_v16 = vmul.u32 2221713035, %v529_v23  ;;  %v538_v51 = vmul.u32 2221713035, %v530_v56  ;;  %v539_v36 = vmul.u32 2221713035, %v531_v15 }
  0x88   :  { %v540_v61 = vshrl.u32 %v532_v50, 16  ;;  %v541_v59 = vshrl.u32 %v533_v20, 16  ;;  %v542_v54 = vshrl.u32 %v534_v40, 16  ;;  %v543_v2 = vshrl.u32 %v535_v10, 16 }
  0x89   :  { %v544_v7 = vshrl.u32 %v536_v41, 16  ;;  %v545_v4 = vshrl.u32 %v537_v16, 16  ;;  %v546_v57 = vshrl.u32 %v538_v51, 16  ;;  %v547_v37 = vshrl.u32 %v539_v36, 16 }
  0x8a   :  { %v548_v38 = vxor.u32 %v540_v61, %v532_v50  ;;  %v549_v44 = vxor.u32 %v541_v59, %v533_v20  ;;  %v550_v24 = vxor.u32 %v542_v54, %v534_v40  ;;  %v551_v39 = vxor.u32 %v543_v2, %v535_v10 }
  0x8b   :  { %v1149_v0 = vxor.u32 %v544_v7, %v536_v41  ;;  %v1151_v17 = vxor.u32 %v545_v4, %v537_v16  ;;  %v1153_v45 = vxor.u32 %v546_v57, %v538_v51  ;;  %v1155_v12 = vxor.u32 %v547_v37, %v539_v36 }
  0x8c   :  { %v480_v19 = vadd.s32 %v472_v52, %v1119_v60  ;;  %v556_v3 = vand.u32 65535, %v548_v38  ;;  %v557_v5 = vand.u32 65535, %v549_v44  ;;  %v558_v53 = vand.u32 65535, %v550_v24 }
  0x8d   :  { %v481_v8 = vadd.s32 %v473_v47, %v1121_v1  ;;  %v559_v22 = vand.u32 65535, %v551_v39  ;;  %v560_v9 = vand.u32 65535, %v1149_v0  ;;  %v561_v55 = vand.u32 65535, %v1151_v17 }
  0x8e   :  { %v482_v25 = vadd.s32 %v474_v48, %v1133_v46  ;;  %v483_v42 = vadd.s32 %v475_v49, %v1138_v21  ;;  %v562_v60 = vand.u32 65535, %v1153_v45  ;;  %v563_v52 = vand.u32 65535, %v1155_v12 }
  0x8f   :  { %v564_v63 = vadd.s32 %v556_v3, %v1143_v43  ;;  %v565_v1 = vadd.s32 %v557_v5, %v477_v58  ;;  %v566_v47 = vadd.s32 %v558_v53, %v478_v62  ;;  %v572_v11 = vshrl.u32 %v548_v38, 16 }
  0x90   :  { %v573_v13 = vshrl.u32 %v549_v44, 16  ;;  %v574_v27 = vshrl.u32 %v550_v24, 16  ;;  %v567_v26 = vadd.s32 %v559_v22, %v479_v14  ;;  %v568_v23 = vadd.s32 %v560_v9, %v480_v19 }
  0x91   :  { %v569_v56 = vadd.s32 %v561_v55, %v481_v8  ;;  %v575_v6 = vshrl.u32 %v551_v39, 16  ;;  %v570_v48 = vadd.s32 %v562_v60, %v482_v25  ;;  %v1174_v46 = vadd.s32 %v563_v52, %v483_v42 }
  0x92   :  { %v576_v18 = vshrl.u32 %v1149_v0, 16  ;;  %v577_v49 = vshrl.u32 %v1151_v17, 16  ;;  %v578_v21 = vshrl.u32 %v1153_v45, 16  ;;  %v579_v43 = vshrl.u32 %v1155_v12, 16 }
  0x93   :  { %v1180_v58 = vadd.s32 %v572_v11, %v564_v63  ;;  %v1182_v15 = vadd.s32 %v573_v13, %v565_v1  ;;  %v1184_v50 = vadd.s32 %v574_v27, %v566_v47  ;;  %v588_v20 = vadd.s32 1975993970, %v857_v28 }
  0x94   :  { %v589_v62 = vadd.s32 1975993970, %v859_v29  ;;  %v590_v40 = vadd.s32 1975993970, %v861_v30  ;;  %v1189_v10 = vadd.s32 %v575_v6, %v567_v26  ;;  %v591_v41 = vadd.s32 1975993970, %v863_v31 }
  0x95   :  { %v592_v14 = vadd.s32 1975993970, %v865_v32  ;;  %v593_v16 = vadd.s32 1975993970, %v867_v33  ;;  %v594_v51 = vadd.s32 1975993970, %v869_v34  ;;  %v584_v39 = vadd.s32 %v576_v18, %v568_v23 }
  0x96   :  { %v595_v36 = vadd.s32 1975993970, %v871_v35  ;;  %v596_v61 = vshrl.u32 %v588_v20, 16  ;;  %v597_v59 = vshrl.u32 %v589_v62, 16  ;;  %v598_v54 = vshrl.u32 %v590_v40, 16 }
  0x97   :  { %v599_v28 = vshrl.u32 %v591_v41, 16  ;;  %v600_v2 = vshrl.u32 %v592_v14, 16  ;;  %v601_v29 = vshrl.u32 %v593_v16, 16  ;;  %v602_v7 = vshrl.u32 %v594_v51, 16 }
  0x98   :  { %v603_v30 = vshrl.u32 %v595_v36, 16  ;;  %v604_v4 = vxor.u32 %v596_v61, %v588_v20  ;;  %v605_v57 = vxor.u32 %v597_v59, %v589_v62  ;;  %v606_v37 = vxor.u32 %v598_v54, %v590_v40 }
  0x99   :  { %v607_v31 = vxor.u32 %v599_v28, %v591_v41  ;;  %v608_v38 = vxor.u32 %v600_v2, %v592_v14  ;;  %v609_v32 = vxor.u32 %v601_v29, %v593_v16  ;;  %v610_v44 = vxor.u32 %v602_v7, %v594_v51 }
  0x9a   :  { %v611_v33 = vxor.u32 %v603_v30, %v595_v36  ;;  %v612_v24 = vmul.u32 2146121005, %v604_v4  ;;  %v613_v34 = vmul.u32 2146121005, %v605_v57  ;;  %v614_v35 = vmul.u32 2146121005, %v606_v37 }
  0x9b   :  { %v615_v0 = vmul.u32 2146121005, %v607_v31  ;;  %v616_v17 = vmul.u32 2146121005, %v608_v38  ;;  %v585_v45 = vadd.s32 %v577_v49, %v569_v56  ;;  %v617_v12 = vmul.u32 2146121005, %v609_v32 }
  0x9c   :  { %v618_v19 = vmul.u32 2146121005, %v610_v44  ;;  %v619_v3 = vmul.u32 2146121005, %v611_v33  ;;  %v620_v5 = vshrl.u32 %v612_v24, 15  ;;  %v621_v53 = vshrl.u32 %v613_v34, 15 }
  0x9d   :  { %v622_v8 = vshrl.u32 %v614_v35, 15  ;;  %v623_v22 = vshrl.u32 %v615_v0, 15  ;;  %v624_v9 = vshrl.u32 %v616_v17, 15  ;;  %v625_v55 = vshrl.u32 %v617_v12, 15 }
  0x9e   :  { %v626_v25 = vshrl.u32 %v618_v19, 15  ;;  %v627_v42 = vshrl.u32 %v619_v3, 15  ;;  %v628_v60 = vxor.u32 %v620_v5, %v612_v24  ;;  %v629_v52 = vxor.u32 %v621_v53, %v613_v34 }
  0x9f   :  { %v630_v63 = vxor.u32 %v622_v8, %v614_v35  ;;  %v631_v1 = vxor.u32 %v623_v22, %v615_v0  ;;  %v632_v47 = vxor.u32 %v624_v9, %v616_v17  ;;  %v633_v11 = vxor.u32 %v625_v55, %v617_v12 }
  0xa0   :  { %v634_v13 = vxor.u32 %v626_v25, %v618_v19  ;;  %v635_v27 = vxor.u32 %v627_v42, %v619_v3  ;;  %v586_v26 = vadd.s32 %v578_v21, %v570_v48  ;;  %v636_v23 = vmul.u32 2221713035, %v628_v60 }
  0xa1   :  { %v637_v56 = vmul.u32 2221713035, %v629_v52  ;;  %v638_v6 = vmul.u32 2221713035, %v630_v63  ;;  %v587_v18 = vadd.s32 %v579_v43, %v1174_v46  ;;  %v639_v49 = vmul.u32 2221713035, %v631_v1 }
  0xa2   :  { %v640_v20 = vmul.u32 2221713035, %v632_v47  ;;  %v641_v62 = vmul.u32 2221713035, %v633_v11  ;;  %v642_v40 = vmul.u32 2221713035, %v634_v13 }
  0xa3   :  { %v643_v41 = vmul.u32 2221713035, %v635_v27  ;;  %v644_v14 = vshrl.u32 %v636_v23, 16  ;;  %v645_v16 = vshrl.u32 %v637_v56, 16  ;;  %v646_v51 = vshrl.u32 %v638_v6, 16 }
  0xa4   :  { %v647_v36 = vshrl.u32 %v639_v49, 16  ;;  %v648_v61 = vshrl.u32 %v640_v20, 16  ;;  %v649_v59 = vshrl.u32 %v641_v62, 16  ;;  %v650_v54 = vshrl.u32 %v642_v40, 16 }
  0xa5   :  { %v651_v28 = vshrl.u32 %v643_v41, 16  ;;  %v652_v2 = vxor.u32 %v644_v14, %v636_v23  ;;  %v653_v48 = vxor.u32 %v645_v16, %v637_v56  ;;  %v654_v21 = vxor.u32 %v646_v51, %v638_v6 }
  0xa6   :  { %v655_v29 = vxor.u32 %v647_v36, %v639_v49  ;;  %v656_v7 = vxor.u32 %v648_v61, %v640_v20  ;;  %v657_v30 = vxor.u32 %v649_v59, %v641_v62  ;;  %v658_v46 = vxor.u32 %v650_v54, %v642_v40 }
  0xa7   :  { %v659_v43 = vxor.u32 %v651_v28, %v643_v41  ;;  %v660_v4 = vand.u32 65535, %v652_v2  ;;  %v661_v57 = vand.u32 65535, %v653_v48  ;;  %v662_v37 = vand.u32 65535, %v654_v21 }
  0xa8   :  { %v663_v31 = vand.u32 65535, %v655_v29  ;;  %v664_v38 = vand.u32 65535, %v656_v7  ;;  %v665_v32 = vand.u32 65535, %v657_v30  ;;  %v666_v44 = vand.u32 65535, %v658_v46 }
  0xa9   :  { %v667_v33 = vand.u32 65535, %v659_v43  ;;  %v668_v24 = vadd.s32 %v660_v4, %v1180_v58  ;;  %v669_v34 = vadd.s32 %v661_v57, %v1182_v15  ;;  %v670_v35 = vadd.s32 %v662_v37, %v1184_v50 }
  0xaa   :  { %v671_v0 = vadd.s32 %v663_v31, %v1189_v10  ;;  %v672_v17 = vadd.s32 %v664_v38, %v584_v39  ;;  %v673_v12 = vadd.s32 %v665_v32, %v585_v45  ;;  %v674_v19 = vadd.s32 %v666_v44, %v586_v26  ;;  %v716_v38 = vld [vmem:[#allocation4] sm:$0xff] }
  0xab   :  { %v675_v3 = vadd.s32 %v667_v33, %v587_v18  ;;  %v676_v5 = vshrl.u32 %v652_v2, 16  ;;  %v677_v53 = vshrl.u32 %v653_v48, 16  ;;  %v678_v8 = vshrl.u32 %v654_v21, 16 }
  0xac   :  { %v679_v22 = vshrl.u32 %v655_v29, 16  ;;  %v680_v9 = vshrl.u32 %v656_v7, 16  ;;  %v681_v55 = vshrl.u32 %v657_v30, 16  ;;  %v682_v25 = vshrl.u32 %v658_v46, 16 }
  0xad   :  { %v683_v42 = vshrl.u32 %v659_v43, 16  ;;  %v684_v60 = vadd.s32 %v676_v5, %v668_v24  ;;  %v685_v58 = vadd.s32 %v677_v53, %v669_v34  ;;  %v686_v52 = vadd.s32 %v678_v8, %v670_v35  ;;  %v717_v24 = vld [vmem:[#allocation4 + $0x8] sm:$0xff] }
  0xae   :  { %v687_v15 = vadd.s32 %v679_v22, %v671_v0  ;;  %v688_v63 = vadd.s32 %v680_v9, %v672_v17  ;;  %v689_v50 = vadd.s32 %v681_v55, %v673_v12  ;;  %v690_v1 = vadd.s32 %v682_v25, %v674_v19 }
  0xaf   :  { %v691_v10 = vadd.s32 %v683_v42, %v675_v3  ;;  %v692_v39 = vcvt.s32.f32 %v684_v60  ;;  %v693_v45 = vcvt.s32.f32 %v685_v58  ;;  %v694_v47 = vcvt.s32.f32 %v686_v52 }
  0xb0   :  { %v695_v11 = vcvt.s32.f32 %v687_v15  ;;  %v696_v13 = vcvt.s32.f32 %v688_v63  ;;  %v697_v27 = vcvt.s32.f32 %v689_v50  ;;  %v698_v26 = vcvt.s32.f32 %v690_v1 }
  0xb1   :  { %v699_v23 = vcvt.s32.f32 %v691_v10  ;;  %v772_v56 = vadd.f32 -393210.0, %v692_v39  ;;  %v773_v6 = vadd.f32 -393210.0, %v693_v45  ;;  %v774_v18 = vadd.f32 -393210.0, %v694_v47 }
  0xb2   :  { %v775_v49 = vadd.f32 -393210.0, %v695_v11  ;;  %v776_v20 = vadd.f32 -393210.0, %v696_v13  ;;  %v777_v62 = vadd.f32 -393210.0, %v697_v27 }
  0xb3   :  { %v778_v40 = vadd.f32 -393210.0, %v698_v26  ;;  %v779_v41 = vadd.f32 -393210.0, %v699_v23  ;;  %v708_v14 = vmul.f32 1.5258789e-05, %v772_v56  ;;  %v709_v16 = vmul.f32 1.5258789e-05, %v773_v6 }
  0xb4   :  { %v710_v51 = vmul.f32 1.5258789e-05, %v774_v18  ;;  %v711_v36 = vmul.f32 1.5258789e-05, %v775_v49  ;;  %v712_v61 = vmul.f32 1.5258789e-05, %v776_v20  ;;  %v713_v59 = vmul.f32 1.5258789e-05, %v777_v62 }
  0xb5   :  { %v714_v54 = vmul.f32 1.5258789e-05, %v778_v40  ;;  %v715_v28 = vmul.f32 1.5258789e-05, %v779_v41  ;;  %v718_v2 = vmul.f32 0.005, %v708_v14  ;;  %v719_v48 = vmul.f32 0.005, %v709_v16 }
  0xb6   :  { %v720_v21 = vmul.f32 0.005, %v710_v51  ;;  %v721_v29 = vmul.f32 0.005, %v711_v36  ;;  %v722_v7 = vmul.f32 0.005, %v712_v61 }
  0xb7   :  { %v723_v30 = vmul.f32 0.005, %v713_v59  ;;  %v724_v46 = vmul.f32 0.005, %v714_v54  ;;  %v725_v43 = vmul.f32 0.005, %v715_v28 }
  0xb8   :  { %v734_v4 = vrot.slane %v719_v48, 6  ;;  %v735_v57 = vrot.slane %v720_v21, 4  ;;  %v736_v37 = vrot.slane %v721_v29, 2 }
  0xb9   :  { %v737_v31 = vrot.slane %v723_v30, 6  ;;  %v738_v32 = vrot.slane %v724_v46, 4  ;;  %v739_v44 = vrot.slane %v725_v43, 2 }
  0xba   :  { %v741_v33 = vsel %vm740_vm0, %v718_v2, %v734_v4  ;;  %v743_v34 = vsel %vm742_vm1, %v735_v57, %v736_v37 }
  0xbb   :  { %v746_v35 = vsel %vm740_vm0, %v722_v7, %v737_v31  ;;  %v745_v0 = vsel %vm744_vm2, %v741_v33, %v743_v34  ;;  %v747_v17 = vsel %vm742_vm1, %v738_v32, %v739_v44 }
  0xbc   :  { %v748_v12 = vsel %vm744_vm2, %v746_v35, %v747_v17  ;;  %v751_v19 = vadd.f32 %v745_v0, %v716_v38 }
  0xbd   :  { %v752_v3 = vadd.f32 %v748_v12, %v717_v24 }
  0xbe   :  { %753 = vst [vmem:[#allocation7] sm:$0xff] %v751_v19 }
  0xbf   :  { %754 = vst [vmem:[#allocation7 + $0x8] sm:$0xff] %v752_v3 }
  0xc0   :  { %765 = dma.vmem_to_hbm [thread:$0]  %s761_s15, 256, %s763_s18, [#allocation6]  }
  0xc1   :  { %832 = dma.done.wait [#allocation6], 256  }
  0xc2   :  { %833 = vsyncadd [#allocation6], 4294967040 }
  0xc3   :  { %770 = vsyncpa [#allocation5], 1 }
  0xc4   :  { %771 = vsyncpa [#allocation6], 1 }

</bundles_post_ra>
